<compile_context>
chip_gen: v7x
topology: tpu7x:2x2x1
jax: 0.10.0
libtpu: 0.0.40
codegen_flags: <defaults>
</compile_context>

<pallas_src>
import functools

import jax
import jax.numpy as jnp
from jax import lax
from jax.experimental import pallas as pl
from jax.experimental.pallas import tpu as pltpu


# MXU operand dtype for the conv matmuls.  float32 preserves forward-hook
# fidelity of the captured features; jnp.bfloat16 halves operand traffic
# (stacked im2col operand is cast once, weights cast on the host).
_CONV_DTYPE = jnp.float32

_SUBLANE = 8  # f32 sublane tile


def _round_up(x, m):
    return (x + m - 1) // m * m


# --------------------------- fused Pallas kernel -----------------------------

def _pad_rows(x, rows):
    """Zero-pad a (C, L) value to `rows` rows (sublane-tile alignment)."""
    if x.shape[0] == rows:
        return x
    pad = jnp.zeros((rows - x.shape[0], x.shape[1]), x.dtype)
    return jnp.concatenate([x, pad], axis=0)


def _conv3x3_relu_im2col(src, w_mat, b_col, m_ref, *, width):
    """relu(conv3x3(src) + b) in lane-dense layout as ONE deep matmul.

    src:   (Cin_p, L) float32, L = TILE_B*H*W (batch packed along lanes).
    w_mat: (Cout, 9*Cin_p) im2col weights, column index = t*Cin_p + c.
    b_col: (Cout, 1) float32.
    m_ref: (9, 1, L) float32 0/1 tap-validity masks (zero padding; also kills
           row-crossing and cross-sample reads introduced by the lane roll).
    returns (Cout, L) float32.
    """
    L = src.shape[-1]
    blocks = []
    t = 0
    for dh in (-1, 0, 1):
        for dw in (-1, 0, 1):
            off = dh * width + dw                       # flat-spatial tap offset
            shifted = src if off == 0 else pltpu.roll(src, (-off) % L, axis=1)
            blocks.append(shifted * m_ref[t])           # mask the Cin-wide input
            t += 1
    stacked = jnp.concatenate(blocks, axis=0)           # (9*Cin_p, L)
    if stacked.dtype != w_mat.dtype:
        stacked = stacked.astype(w_mat.dtype)           # single hoisted cast
    acc = jnp.dot(w_mat, stacked, preferred_element_type=jnp.float32)
    return jnp.maximum(acc + b_col, 0.0)


def _fused_forward_kernel(x_ref, m_ref, w1_ref, b1_ref, w2_ref, b2_ref,
                          wfc_ref, bfc_ref, f1_ref, f2_ref, out_ref,
                          *, width, spatial, tile_b):
    # One grid step == TILE_B batch samples packed along the lane axis.
    c1_pad = w2_ref.shape[1] // 9

    x = x_ref[...]                                                  # (Cin_p, L)
    y1 = _conv3x3_relu_im2col(x, w1_ref[...], b1_ref[...], m_ref, width=width)
    for b in range(tile_b):                                         # "relu1"
        f1_ref[b] = y1[:, b * spatial:(b + 1) * spatial]

    y2 = _conv3x3_relu_im2col(_pad_rows(y1, c1_pad), w2_ref[...], b2_ref[...],
                              m_ref, width=width)
    for b in range(tile_b):                                         # "relu2"
        f2_ref[b] = y2[:, b * spatial:(b + 1) * spatial]

    # Head: pool FIRST (per-sample lane reduce), then the tiny fc matvec.
    inv_s = 1.0 / spatial
    wfc = wfc_ref[...]
    bfc = bfc_ref[...]
    for b in range(tile_b):
        pooled = jnp.sum(y2[:, b * spatial:(b + 1) * spatial], axis=1,
                         keepdims=True) * inv_s                     # (C2, 1)
        out_ref[:, b:b + 1] = (
            jnp.dot(wfc, pooled, preferred_element_type=jnp.float32) + bfc)


def _fused_forward(x_packed, masks, w1_mat, b1c, w2_mat, b2c, wfc_t, bfc_c,
                   *, width, spatial, tile_b, n_total):
    nb, cin_p, L = x_packed.shape
    C1 = b1c.shape[0]
    C2 = b2c.shape[0]
    NCLS = wfc_t.shape[0]
    kernel = functools.partial(_fused_forward_kernel, width=width,
                               spatial=spatial, tile_b=tile_b)
    return pl.pallas_call(
        kernel,
        out_shape=(
            jax.ShapeDtypeStruct((n_total, C1, spatial), jnp.float32),  # relu1
            jax.ShapeDtypeStruct((n_total, C2, spatial), jnp.float32),  # relu2
            jax.ShapeDtypeStruct((nb, NCLS, tile_b), jnp.float32),      # logits
        ),
        grid=(nb,),
        in_specs=[
            pl.BlockSpec((None, cin_p, L), lambda n: (n, 0, 0)),   # packed x
            pl.BlockSpec((9, 1, L), lambda n: (0, 0, 0)),          # tap masks
            pl.BlockSpec(w1_mat.shape, lambda n: (0, 0)),          # conv1 im2col W
            pl.BlockSpec((C1, 1), lambda n: (0, 0)),               # conv1 bias
            pl.BlockSpec(w2_mat.shape, lambda n: (0, 0)),          # conv2 im2col W
            pl.BlockSpec((C2, 1), lambda n: (0, 0)),               # conv2 bias
            pl.BlockSpec((NCLS, C2), lambda n: (0, 0)),            # fc weight^T
            pl.BlockSpec((NCLS, 1), lambda n: (0, 0)),             # fc bias
        ],
        out_specs=(
            pl.BlockSpec((tile_b, C1, spatial), lambda n: (n, 0, 0)),
            pl.BlockSpec((tile_b, C2, spatial), lambda n: (n, 0, 0)),
            pl.BlockSpec((None, NCLS, tile_b), lambda n: (n, 0, 0)),
        ),
        compiler_params=pltpu.CompilerParams(
            dimension_semantics=("parallel",),      # batch-block axis -> 2 TCs
            vmem_limit_bytes=32 * 1024 * 1024,      # modest; safe on v5e/v6e/v7x
        ),
    )(x_packed, masks, w1_mat, b1c, w2_mat, b2c, wfc_t, bfc_c)


# ----------------------------- host-side glue --------------------------------

def _shift_masks(H, W):
    """(9, 1, H*W) float32 validity masks for the 9 taps of a 3x3 / pad-1 conv."""
    S = H * W
    h = jnp.arange(S, dtype=jnp.int32) // W
    w = jnp.arange(S, dtype=jnp.int32) % W
    rows = []
    for dh in (-1, 0, 1):
        for dw in (-1, 0, 1):
            valid = (h + dh >= 0) & (h + dh < H) & (w + dw >= 0) & (w + dw < W)
            rows.append(valid)
    return jnp.stack(rows).astype(jnp.float32).reshape(9, 1, S)


def _im2col_weight(w_oihw, cin_pad):
    """(O, I, 3, 3) -> (O, 9*cin_pad); column index = (kh*3+kw)*cin_pad + i."""
    O, I, KH, KW = w_oihw.shape
    w = jnp.transpose(w_oihw, (0, 2, 3, 1))                 # (O, KH, KW, I)
    if cin_pad != I:
        w = jnp.pad(w, ((0, 0), (0, 0), (0, 0), (0, cin_pad - I)))
    return w.reshape(O, KH * KW * cin_pad)


def _choose_tile_b(n, s, *, max_lanes=2048, min_lanes=512):
    """Samples packed per grid step: wide lane dim, but keep >=2 steps for the
    two v7x TensorCores unless each step would be narrower than ~512 lanes."""
    divisors = [d for d in range(1, n + 1) if n % d == 0]
    fitting = [d for d in divisors if d * s <= max_lanes]
    if not fitting:
        return 1
    tile_b = max(fitting)
    steps = n // tile_b
    if steps % 2 == 1 and steps < n:
        for d in sorted(fitting, reverse=True):
            if (n // d) % 2 == 0 and d * s >= min_lanes:
                return d
    return tile_b


def init_params(key, cin=4, c1=8, c2=16, num_classes=10):
    ks = jax.random.split(key, 6)
    scale = 0.1
    return {
        "conv1_w": scale * jax.random.normal(ks[0], (c1, cin, 3, 3), jnp.float32),
        "conv1_b": scale * jax.random.normal(ks[1], (c1,), jnp.float32),
        "conv2_w": scale * jax.random.normal(ks[2], (c2, c1, 3, 3), jnp.float32),
        "conv2_b": scale * jax.random.normal(ks[3], (c2,), jnp.float32),
        "fc_w":    scale * jax.random.normal(ks[4], (c2, num_classes), jnp.float32),
        "fc_b":    scale * jax.random.normal(ks[5], (num_classes,), jnp.float32),
    }


@functools.partial(jax.jit, static_argnames=("layers",))
def feature_extractor_forward(x_nchw, params, layers=("relu1", "relu2")):
    """Functional equivalent of FeatureExtractor.forward: returns (out, features).

    Features are captured in NCHW, exactly like a PyTorch forward hook would.
    """
    N, Cin, H, W = x_nchw.shape
    S = H * W
    C1 = params["conv1_w"].shape[0]
    C2 = params["conv2_w"].shape[0]
    NCLS = params["fc_w"].shape[1]

    tile_b = _choose_tile_b(N, S)
    nb = N // tile_b
    L = tile_b * S
    cin_p = _round_up(Cin, _SUBLANE)     # sublane-aligned im2col blocks
    c1_p = _round_up(C1, _SUBLANE)

    # NCHW -> lane-packed (NB, Cin_p, TILE_B*S); samples packed along lanes.
    x_cs = x_nchw.astype(jnp.float32).reshape(N, Cin, S)
    if cin_p != Cin:
        x_cs = jnp.pad(x_cs, ((0, 0), (0, cin_p - Cin), (0, 0)))
    x_packed = (x_cs.reshape(nb, tile_b, cin_p, S)
                .transpose(0, 2, 1, 3).reshape(nb, cin_p, L))

    # Tap masks, tiled over the packed samples (pattern repeats every S lanes).
    masks = jnp.tile(_shift_masks(H, W), (1, 1, tile_b))          # (9, 1, L)

    # Host-side im2col weight matrices (zero-padded input channels) + biases.
    w1_mat = _im2col_weight(params["conv1_w"], cin_p).astype(_CONV_DTYPE)
    w2_mat = _im2col_weight(params["conv2_w"], c1_p).astype(_CONV_DTYPE)
    b1c = params["conv1_b"].reshape(C1, 1).astype(jnp.float32)
    b2c = params["conv2_b"].reshape(C2, 1).astype(jnp.float32)
    wfc_t = params["fc_w"].T.astype(jnp.float32)                  # (NCLS, C2)
    bfc_c = params["fc_b"].reshape(NCLS, 1).astype(jnp.float32)

    f1, f2, out_blk = _fused_forward(x_packed, masks, w1_mat, b1c, w2_mat, b2c,
                                     wfc_t, bfc_c, width=W, spatial=S,
                                     tile_b=tile_b, n_total=N)

    features = {}
    if "relu1" in layers:
        features["relu1"] = f1.reshape(N, C1, H, W)   # NCHW, pure reshape
    if "relu2" in layers:
        features["relu2"] = f2.reshape(N, C2, H, W)   # NCHW, pure reshape
    out = jnp.transpose(out_blk, (0, 2, 1)).reshape(N, NCLS)      # tiny
    return out, features


def reference_forward(x_nchw, params):
    """Independent pure-JAX (XLA) reference for correctness checking."""
    dn = ("NCHW", "OIHW", "NCHW")
    y1 = lax.conv_general_dilated(x_nchw, params["conv1_w"], (1, 1), "SAME",
                                  dimension_numbers=dn)
    y1 = jnp.maximum(y1 + params["conv1_b"][None, :, None, None], 0.0)
    y2 = lax.conv_general_dilated(y1, params["conv2_w"], (1, 1), "SAME",
                                  dimension_numbers=dn)
    y2 = jnp.maximum(y2 + params["conv2_b"][None, :, None, None], 0.0)
    pooled = jnp.mean(y2, axis=(2, 3))
    out = pooled @ params["fc_w"] + params["fc_b"]
    return out, {"relu1": y1, "relu2": y2}


# ------------------------------- main ----------------------------------------

if __name__ == "__main__":
    key = jax.random.PRNGKey(0)
    k_x, k_p = jax.random.split(key)

    x = jax.random.normal(k_x, (2, 4, 16, 16), jnp.float32)   # NCHW, like PyTorch
    params = init_params(k_p, cin=4, c1=8, c2=16, num_classes=10)

    out, feats = feature_extractor_forward(x, params, layers=("relu1", "relu2"))
    jax.block_until_ready(out)
    for v in feats.values():
        jax.block_until_ready(v)

    assert out.shape == (2, 10)
    assert feats["relu1"].shape == (2, 8, 16, 16)
    assert feats["relu2"].shape == (2, 16, 16, 16)

    # Numerical check vs an independent pure-JAX reference (f32 operands in the
    # kernel -> tight tolerance).
    out_expected, feats_expected = reference_forward(x, params)
    assert jnp.allclose(feats["relu1"], feats_expected["relu1"], rtol=1e-2, atol=1e-2)
    assert jnp.allclose(feats["relu2"], feats_expected["relu2"], rtol=1e-2, atol=1e-2)
    assert jnp.allclose(out, out_expected, rtol=1e-2, atol=1e-2)

    print("KERNEL_OK")
</pallas_src>

<mosaic_0001>
module attributes {stable_mosaic.version = 11 : i64} {
  func.func @_fused_forward_kernel(%arg0: i32, %arg1: memref<1x8x512xf32, #tpu.memory_space<vmem>>, %arg2: memref<9x1x512xf32, #tpu.memory_space<vmem>>, %arg3: memref<8x72xf32, #tpu.memory_space<vmem>>, %arg4: memref<8x1xf32, #tpu.memory_space<vmem>>, %arg5: memref<16x72xf32, #tpu.memory_space<vmem>>, %arg6: memref<16x1xf32, #tpu.memory_space<vmem>>, %arg7: memref<10x16xf32, #tpu.memory_space<vmem>>, %arg8: memref<10x1xf32, #tpu.memory_space<vmem>>, %arg9: memref<2x8x256xf32, #tpu.memory_space<vmem>>, %arg10: memref<2x16x256xf32, #tpu.memory_space<vmem>>, %arg11: memref<1x10x2xf32, #tpu.memory_space<vmem>>) attributes {dimension_semantics = [#tpu.dimension_semantics<parallel>], iteration_bounds = array<i64: 1>, scalar_prefetch = 0 : i64, scratch_operands = 0 : i64, tpu.core_type = #tpu.core_type<tc>, window_params = [{transform_indices = @transform_0, window_bounds = array<i64: 1, 8, 512>}, {pipeline_mode = #tpu.pipeline_mode<synchronous>, transform_indices = @transform_1, window_bounds = array<i64: 9, 1, 512>}, {pipeline_mode = #tpu.pipeline_mode<synchronous>, transform_indices = @transform_2, window_bounds = array<i64: 8, 72>}, {pipeline_mode = #tpu.pipeline_mode<synchronous>, transform_indices = @transform_3, window_bounds = array<i64: 8, 1>}, {pipeline_mode = #tpu.pipeline_mode<synchronous>, transform_indices = @transform_4, window_bounds = array<i64: 16, 72>}, {pipeline_mode = #tpu.pipeline_mode<synchronous>, transform_indices = @transform_5, window_bounds = array<i64: 16, 1>}, {pipeline_mode = #tpu.pipeline_mode<synchronous>, transform_indices = @transform_6, window_bounds = array<i64: 10, 16>}, {pipeline_mode = #tpu.pipeline_mode<synchronous>, transform_indices = @transform_7, window_bounds = array<i64: 10, 1>}, {transform_indices = @transform_8, window_bounds = array<i64: 2, 8, 256>}, {transform_indices = @transform_9, window_bounds = array<i64: 2, 16, 256>}, {transform_indices = @transform_10, window_bounds = array<i64: 1, 10, 2>}]} {
    %c0 = arith.constant 0 : index
    %c0_0 = arith.constant 0 : index
    %c0_1 = arith.constant 0 : index
    %0 = vector.load %arg1[%c0, %c0_0, %c0_1] : memref<1x8x512xf32, #tpu.memory_space<vmem>>, vector<1x8x512xf32>
    %1 = vector.shape_cast %0 : vector<1x8x512xf32> to vector<8x512xf32>
    %c0_2 = arith.constant 0 : index
    %c0_3 = arith.constant 0 : index
    %2 = vector.load %arg3[%c0_2, %c0_3] : memref<8x72xf32, #tpu.memory_space<vmem>>, vector<8x72xf32>
    %c0_4 = arith.constant 0 : index
    %c0_5 = arith.constant 0 : index
    %3 = vector.load %arg4[%c0_4, %c0_5] : memref<8x1xf32, #tpu.memory_space<vmem>>, vector<8x1xf32>
    %c17_i32 = arith.constant 17 : i32
    %4 = tpu.dynamic_rotate %1 by %c17_i32 dim 1 : vector<8x512xf32>, i32 -> vector<8x512xf32>
    %c0_6 = arith.constant 0 : index
    %c0_7 = arith.constant 0 : index
    %c0_8 = arith.constant 0 : index
    %5 = vector.load %arg2[%c0_6, %c0_7, %c0_8] : memref<9x1x512xf32, #tpu.memory_space<vmem>>, vector<1x1x512xf32>
    %6 = vector.shape_cast %5 : vector<1x1x512xf32> to vector<1x512xf32>
    %7 = vector.broadcast %6 : vector<1x512xf32> to vector<8x512xf32>
    %8 = arith.mulf %4, %7 : vector<8x512xf32>
    %c16_i32 = arith.constant 16 : i32
    %9 = tpu.dynamic_rotate %1 by %c16_i32 dim 1 : vector<8x512xf32>, i32 -> vector<8x512xf32>
    %c1 = arith.constant 1 : index
    %c0_9 = arith.constant 0 : index
    %c0_10 = arith.constant 0 : index
    %10 = vector.load %arg2[%c1, %c0_9, %c0_10] : memref<9x1x512xf32, #tpu.memory_space<vmem>>, vector<1x1x512xf32>
    %11 = vector.shape_cast %10 : vector<1x1x512xf32> to vector<1x512xf32>
    %12 = vector.broadcast %11 : vector<1x512xf32> to vector<8x512xf32>
    %13 = arith.mulf %9, %12 : vector<8x512xf32>
    %c15_i32 = arith.constant 15 : i32
    %14 = tpu.dynamic_rotate %1 by %c15_i32 dim 1 : vector<8x512xf32>, i32 -> vector<8x512xf32>
    %c2 = arith.constant 2 : index
    %c0_11 = arith.constant 0 : index
    %c0_12 = arith.constant 0 : index
    %15 = vector.load %arg2[%c2, %c0_11, %c0_12] : memref<9x1x512xf32, #tpu.memory_space<vmem>>, vector<1x1x512xf32>
    %16 = vector.shape_cast %15 : vector<1x1x512xf32> to vector<1x512xf32>
    %17 = vector.broadcast %16 : vector<1x512xf32> to vector<8x512xf32>
    %18 = arith.mulf %14, %17 : vector<8x512xf32>
    %c1_i32 = arith.constant 1 : i32
    %19 = tpu.dynamic_rotate %1 by %c1_i32 dim 1 : vector<8x512xf32>, i32 -> vector<8x512xf32>
    %c3 = arith.constant 3 : index
    %c0_13 = arith.constant 0 : index
    %c0_14 = arith.constant 0 : index
    %20 = vector.load %arg2[%c3, %c0_13, %c0_14] : memref<9x1x512xf32, #tpu.memory_space<vmem>>, vector<1x1x512xf32>
    %21 = vector.shape_cast %20 : vector<1x1x512xf32> to vector<1x512xf32>
    %22 = vector.broadcast %21 : vector<1x512xf32> to vector<8x512xf32>
    %23 = arith.mulf %19, %22 : vector<8x512xf32>
    %c4 = arith.constant 4 : index
    %c0_15 = arith.constant 0 : index
    %c0_16 = arith.constant 0 : index
    %24 = vector.load %arg2[%c4, %c0_15, %c0_16] : memref<9x1x512xf32, #tpu.memory_space<vmem>>, vector<1x1x512xf32>
    %25 = vector.shape_cast %24 : vector<1x1x512xf32> to vector<1x512xf32>
    %26 = vector.broadcast %25 : vector<1x512xf32> to vector<8x512xf32>
    %27 = arith.mulf %1, %26 : vector<8x512xf32>
    %c511_i32 = arith.constant 511 : i32
    %28 = tpu.dynamic_rotate %1 by %c511_i32 dim 1 : vector<8x512xf32>, i32 -> vector<8x512xf32>
    %c5 = arith.constant 5 : index
    %c0_17 = arith.constant 0 : index
    %c0_18 = arith.constant 0 : index
    %29 = vector.load %arg2[%c5, %c0_17, %c0_18] : memref<9x1x512xf32, #tpu.memory_space<vmem>>, vector<1x1x512xf32>
    %30 = vector.shape_cast %29 : vector<1x1x512xf32> to vector<1x512xf32>
    %31 = vector.broadcast %30 : vector<1x512xf32> to vector<8x512xf32>
    %32 = arith.mulf %28, %31 : vector<8x512xf32>
    %c497_i32 = arith.constant 497 : i32
    %33 = tpu.dynamic_rotate %1 by %c497_i32 dim 1 : vector<8x512xf32>, i32 -> vector<8x512xf32>
    %c6 = arith.constant 6 : index
    %c0_19 = arith.constant 0 : index
    %c0_20 = arith.constant 0 : index
    %34 = vector.load %arg2[%c6, %c0_19, %c0_20] : memref<9x1x512xf32, #tpu.memory_space<vmem>>, vector<1x1x512xf32>
    %35 = vector.shape_cast %34 : vector<1x1x512xf32> to vector<1x512xf32>
    %36 = vector.broadcast %35 : vector<1x512xf32> to vector<8x512xf32>
    %37 = arith.mulf %33, %36 : vector<8x512xf32>
    %c496_i32 = arith.constant 496 : i32
    %38 = tpu.dynamic_rotate %1 by %c496_i32 dim 1 : vector<8x512xf32>, i32 -> vector<8x512xf32>
    %c7 = arith.constant 7 : index
    %c0_21 = arith.constant 0 : index
    %c0_22 = arith.constant 0 : index
    %39 = vector.load %arg2[%c7, %c0_21, %c0_22] : memref<9x1x512xf32, #tpu.memory_space<vmem>>, vector<1x1x512xf32>
    %40 = vector.shape_cast %39 : vector<1x1x512xf32> to vector<1x512xf32>
    %41 = vector.broadcast %40 : vector<1x512xf32> to vector<8x512xf32>
    %42 = arith.mulf %38, %41 : vector<8x512xf32>
    %c495_i32 = arith.constant 495 : i32
    %43 = tpu.dynamic_rotate %1 by %c495_i32 dim 1 : vector<8x512xf32>, i32 -> vector<8x512xf32>
    %c8 = arith.constant 8 : index
    %c0_23 = arith.constant 0 : index
    %c0_24 = arith.constant 0 : index
    %44 = vector.load %arg2[%c8, %c0_23, %c0_24] : memref<9x1x512xf32, #tpu.memory_space<vmem>>, vector<1x1x512xf32>
    %45 = vector.shape_cast %44 : vector<1x1x512xf32> to vector<1x512xf32>
    %46 = vector.broadcast %45 : vector<1x512xf32> to vector<8x512xf32>
    %47 = arith.mulf %43, %46 : vector<8x512xf32>
    %48 = tpu.concatenate %8, %13, %18, %23, %27, %32, %37, %42, %47 in 0 : vector<8x512xf32>, vector<8x512xf32>, vector<8x512xf32>, vector<8x512xf32>, vector<8x512xf32>, vector<8x512xf32>, vector<8x512xf32>, vector<8x512xf32>, vector<8x512xf32> -> vector<72x512xf32>
    %cst = arith.constant dense<0.000000e+00> : vector<8x512xf32>
    %49 = tpu.matmul %2, %48, %cst {dimension_numbers = #tpu.dot_dimension_numbers<[1], [0], [0], [1], [0, 0, 1, 1], [], []>} : vector<8x72xf32>, vector<72x512xf32>, vector<8x512xf32> -> vector<8x512xf32>
    %50 = vector.broadcast %3 : vector<8x1xf32> to vector<8x512xf32>
    %51 = arith.addf %49, %50 : vector<8x512xf32>
    %cst_25 = arith.constant 0.000000e+00 : f32
    %52 = vector.broadcast %cst_25 : f32 to vector<8x512xf32>
    %53 = arith.maximumf %51, %52 : vector<8x512xf32>
    %54 = vector.extract_strided_slice %53 {offsets = [0, 0], sizes = [8, 256], strides = [1, 1]} : vector<8x512xf32> to vector<8x256xf32>
    %c0_26 = arith.constant 0 : index
    %c0_27 = arith.constant 0 : index
    %c0_28 = arith.constant 0 : index
    %55 = vector.load %arg9[%c0_26, %c0_27, %c0_28] : memref<2x8x256xf32, #tpu.memory_space<vmem>>, vector<1x8x256xf32>
    %56 = vector.shape_cast %55 : vector<1x8x256xf32> to vector<8x256xf32>
    %57 = vector.shape_cast %54 : vector<8x256xf32> to vector<1x8x256xf32>
    tpu.vector_store %arg9[%c0_26, %c0_27, %c0_28], %57 {strides = array<i32>} : memref<2x8x256xf32, #tpu.memory_space<vmem>>, vector<1x8x256xf32>,
    %58 = vector.extract_strided_slice %53 {offsets = [0, 256], sizes = [8, 256], strides = [1, 1]} : vector<8x512xf32> to vector<8x256xf32>
    %c1_29 = arith.constant 1 : index
    %c0_30 = arith.constant 0 : index
    %c0_31 = arith.constant 0 : index
    %59 = vector.load %arg9[%c1_29, %c0_30, %c0_31] : memref<2x8x256xf32, #tpu.memory_space<vmem>>, vector<1x8x256xf32>
    %60 = vector.shape_cast %59 : vector<1x8x256xf32> to vector<8x256xf32>
    %61 = vector.shape_cast %58 : vector<8x256xf32> to vector<1x8x256xf32>
    tpu.vector_store %arg9[%c1_29, %c0_30, %c0_31], %61 {strides = array<i32>} : memref<2x8x256xf32, #tpu.memory_space<vmem>>, vector<1x8x256xf32>,
    %c0_32 = arith.constant 0 : index
    %c0_33 = arith.constant 0 : index
    %62 = vector.load %arg5[%c0_32, %c0_33] : memref<16x72xf32, #tpu.memory_space<vmem>>, vector<16x72xf32>
    %c0_34 = arith.constant 0 : index
    %c0_35 = arith.constant 0 : index
    %63 = vector.load %arg6[%c0_34, %c0_35] : memref<16x1xf32, #tpu.memory_space<vmem>>, vector<16x1xf32>
    %c17_i32_36 = arith.constant 17 : i32
    %64 = tpu.dynamic_rotate %53 by %c17_i32_36 dim 1 : vector<8x512xf32>, i32 -> vector<8x512xf32>
    %c0_37 = arith.constant 0 : index
    %c0_38 = arith.constant 0 : index
    %c0_39 = arith.constant 0 : index
    %65 = vector.load %arg2[%c0_37, %c0_38, %c0_39] : memref<9x1x512xf32, #tpu.memory_space<vmem>>, vector<1x1x512xf32>
    %66 = vector.shape_cast %65 : vector<1x1x512xf32> to vector<1x512xf32>
    %67 = vector.broadcast %66 : vector<1x512xf32> to vector<8x512xf32>
    %68 = arith.mulf %64, %67 : vector<8x512xf32>
    %c16_i32_40 = arith.constant 16 : i32
    %69 = tpu.dynamic_rotate %53 by %c16_i32_40 dim 1 : vector<8x512xf32>, i32 -> vector<8x512xf32>
    %c1_41 = arith.constant 1 : index
    %c0_42 = arith.constant 0 : index
    %c0_43 = arith.constant 0 : index
    %70 = vector.load %arg2[%c1_41, %c0_42, %c0_43] : memref<9x1x512xf32, #tpu.memory_space<vmem>>, vector<1x1x512xf32>
    %71 = vector.shape_cast %70 : vector<1x1x512xf32> to vector<1x512xf32>
    %72 = vector.broadcast %71 : vector<1x512xf32> to vector<8x512xf32>
    %73 = arith.mulf %69, %72 : vector<8x512xf32>
    %c15_i32_44 = arith.constant 15 : i32
    %74 = tpu.dynamic_rotate %53 by %c15_i32_44 dim 1 : vector<8x512xf32>, i32 -> vector<8x512xf32>
    %c2_45 = arith.constant 2 : index
    %c0_46 = arith.constant 0 : index
    %c0_47 = arith.constant 0 : index
    %75 = vector.load %arg2[%c2_45, %c0_46, %c0_47] : memref<9x1x512xf32, #tpu.memory_space<vmem>>, vector<1x1x512xf32>
    %76 = vector.shape_cast %75 : vector<1x1x512xf32> to vector<1x512xf32>
    %77 = vector.broadcast %76 : vector<1x512xf32> to vector<8x512xf32>
    %78 = arith.mulf %74, %77 : vector<8x512xf32>
    %c1_i32_48 = arith.constant 1 : i32
    %79 = tpu.dynamic_rotate %53 by %c1_i32_48 dim 1 : vector<8x512xf32>, i32 -> vector<8x512xf32>
    %c3_49 = arith.constant 3 : index
    %c0_50 = arith.constant 0 : index
    %c0_51 = arith.constant 0 : index
    %80 = vector.load %arg2[%c3_49, %c0_50, %c0_51] : memref<9x1x512xf32, #tpu.memory_space<vmem>>, vector<1x1x512xf32>
    %81 = vector.shape_cast %80 : vector<1x1x512xf32> to vector<1x512xf32>
    %82 = vector.broadcast %81 : vector<1x512xf32> to vector<8x512xf32>
    %83 = arith.mulf %79, %82 : vector<8x512xf32>
    %c4_52 = arith.constant 4 : index
    %c0_53 = arith.constant 0 : index
    %c0_54 = arith.constant 0 : index
    %84 = vector.load %arg2[%c4_52, %c0_53, %c0_54] : memref<9x1x512xf32, #tpu.memory_space<vmem>>, vector<1x1x512xf32>
    %85 = vector.shape_cast %84 : vector<1x1x512xf32> to vector<1x512xf32>
    %86 = vector.broadcast %85 : vector<1x512xf32> to vector<8x512xf32>
    %87 = arith.mulf %53, %86 : vector<8x512xf32>
    %c511_i32_55 = arith.constant 511 : i32
    %88 = tpu.dynamic_rotate %53 by %c511_i32_55 dim 1 : vector<8x512xf32>, i32 -> vector<8x512xf32>
    %c5_56 = arith.constant 5 : index
    %c0_57 = arith.constant 0 : index
    %c0_58 = arith.constant 0 : index
    %89 = vector.load %arg2[%c5_56, %c0_57, %c0_58] : memref<9x1x512xf32, #tpu.memory_space<vmem>>, vector<1x1x512xf32>
    %90 = vector.shape_cast %89 : vector<1x1x512xf32> to vector<1x512xf32>
    %91 = vector.broadcast %90 : vector<1x512xf32> to vector<8x512xf32>
    %92 = arith.mulf %88, %91 : vector<8x512xf32>
    %c497_i32_59 = arith.constant 497 : i32
    %93 = tpu.dynamic_rotate %53 by %c497_i32_59 dim 1 : vector<8x512xf32>, i32 -> vector<8x512xf32>
    %c6_60 = arith.constant 6 : index
    %c0_61 = arith.constant 0 : index
    %c0_62 = arith.constant 0 : index
    %94 = vector.load %arg2[%c6_60, %c0_61, %c0_62] : memref<9x1x512xf32, #tpu.memory_space<vmem>>, vector<1x1x512xf32>
    %95 = vector.shape_cast %94 : vector<1x1x512xf32> to vector<1x512xf32>
    %96 = vector.broadcast %95 : vector<1x512xf32> to vector<8x512xf32>
    %97 = arith.mulf %93, %96 : vector<8x512xf32>
    %c496_i32_63 = arith.constant 496 : i32
    %98 = tpu.dynamic_rotate %53 by %c496_i32_63 dim 1 : vector<8x512xf32>, i32 -> vector<8x512xf32>
    %c7_64 = arith.constant 7 : index
    %c0_65 = arith.constant 0 : index
    %c0_66 = arith.constant 0 : index
    %99 = vector.load %arg2[%c7_64, %c0_65, %c0_66] : memref<9x1x512xf32, #tpu.memory_space<vmem>>, vector<1x1x512xf32>
    %100 = vector.shape_cast %99 : vector<1x1x512xf32> to vector<1x512xf32>
    %101 = vector.broadcast %100 : vector<1x512xf32> to vector<8x512xf32>
    %102 = arith.mulf %98, %101 : vector<8x512xf32>
    %c495_i32_67 = arith.constant 495 : i32
    %103 = tpu.dynamic_rotate %53 by %c495_i32_67 dim 1 : vector<8x512xf32>, i32 -> vector<8x512xf32>
    %c8_68 = arith.constant 8 : index
    %c0_69 = arith.constant 0 : index
    %c0_70 = arith.constant 0 : index
    %104 = vector.load %arg2[%c8_68, %c0_69, %c0_70] : memref<9x1x512xf32, #tpu.memory_space<vmem>>, vector<1x1x512xf32>
    %105 = vector.shape_cast %104 : vector<1x1x512xf32> to vector<1x512xf32>
    %106 = vector.broadcast %105 : vector<1x512xf32> to vector<8x512xf32>
    %107 = arith.mulf %103, %106 : vector<8x512xf32>
    %108 = tpu.concatenate %68, %73, %78, %83, %87, %92, %97, %102, %107 in 0 : vector<8x512xf32>, vector<8x512xf32>, vector<8x512xf32>, vector<8x512xf32>, vector<8x512xf32>, vector<8x512xf32>, vector<8x512xf32>, vector<8x512xf32>, vector<8x512xf32> -> vector<72x512xf32>
    %cst_71 = arith.constant dense<0.000000e+00> : vector<16x512xf32>
    %109 = tpu.matmul %62, %108, %cst_71 {dimension_numbers = #tpu.dot_dimension_numbers<[1], [0], [0], [1], [0, 0, 1, 1], [], []>} : vector<16x72xf32>, vector<72x512xf32>, vector<16x512xf32> -> vector<16x512xf32>
    %110 = vector.broadcast %63 : vector<16x1xf32> to vector<16x512xf32>
    %111 = arith.addf %109, %110 : vector<16x512xf32>
    %cst_72 = arith.constant 0.000000e+00 : f32
    %112 = vector.broadcast %cst_72 : f32 to vector<16x512xf32>
    %113 = arith.maximumf %111, %112 : vector<16x512xf32>
    %114 = vector.extract_strided_slice %113 {offsets = [0, 0], sizes = [16, 256], strides = [1, 1]} : vector<16x512xf32> to vector<16x256xf32>
    %c0_73 = arith.constant 0 : index
    %c0_74 = arith.constant 0 : index
    %c0_75 = arith.constant 0 : index
    %115 = vector.load %arg10[%c0_73, %c0_74, %c0_75] : memref<2x16x256xf32, #tpu.memory_space<vmem>>, vector<1x16x256xf32>
    %116 = vector.shape_cast %115 : vector<1x16x256xf32> to vector<16x256xf32>
    %117 = vector.shape_cast %114 : vector<16x256xf32> to vector<1x16x256xf32>
    tpu.vector_store %arg10[%c0_73, %c0_74, %c0_75], %117 {strides = array<i32>} : memref<2x16x256xf32, #tpu.memory_space<vmem>>, vector<1x16x256xf32>,
    %118 = vector.extract_strided_slice %113 {offsets = [0, 256], sizes = [16, 256], strides = [1, 1]} : vector<16x512xf32> to vector<16x256xf32>
    %c1_76 = arith.constant 1 : index
    %c0_77 = arith.constant 0 : index
    %c0_78 = arith.constant 0 : index
    %119 = vector.load %arg10[%c1_76, %c0_77, %c0_78] : memref<2x16x256xf32, #tpu.memory_space<vmem>>, vector<1x16x256xf32>
    %120 = vector.shape_cast %119 : vector<1x16x256xf32> to vector<16x256xf32>
    %121 = vector.shape_cast %118 : vector<16x256xf32> to vector<1x16x256xf32>
    tpu.vector_store %arg10[%c1_76, %c0_77, %c0_78], %121 {strides = array<i32>} : memref<2x16x256xf32, #tpu.memory_space<vmem>>, vector<1x16x256xf32>,
    %c0_79 = arith.constant 0 : index
    %c0_80 = arith.constant 0 : index
    %122 = vector.load %arg7[%c0_79, %c0_80] : memref<10x16xf32, #tpu.memory_space<vmem>>, vector<10x16xf32>
    %c0_81 = arith.constant 0 : index
    %c0_82 = arith.constant 0 : index
    %123 = vector.load %arg8[%c0_81, %c0_82] : memref<10x1xf32, #tpu.memory_space<vmem>>, vector<10x1xf32>
    %124 = vector.extract_strided_slice %113 {offsets = [0, 0], sizes = [16, 256], strides = [1, 1]} : vector<16x512xf32> to vector<16x256xf32>
    %cst_83 = arith.constant dense<0.000000e+00> : vector<16xf32>
    %125 = vector.multi_reduction <add>, %124, %cst_83 [1] : vector<16x256xf32> to vector<16xf32>
    %126 = vector.shape_cast %125 : vector<16xf32> to vector<16x1xf32>
    %cst_84 = arith.constant 3.906250e-03 : f32
    %127 = vector.broadcast %cst_84 : f32 to vector<16x1xf32>
    %128 = arith.mulf %126, %127 : vector<16x1xf32>
    %cst_85 = arith.constant dense<0.000000e+00> : vector<10x1xf32>
    %129 = tpu.matmul %122, %128, %cst_85 {dimension_numbers = #tpu.dot_dimension_numbers<[1], [0], [0], [1], [0, 0, 1, 1], [], []>} : vector<10x16xf32>, vector<16x1xf32>, vector<10x1xf32> -> vector<10x1xf32>
    %130 = arith.addf %129, %123 : vector<10x1xf32>
    %c0_86 = arith.constant 0 : index
    %c0_87 = arith.constant 0 : index
    %c0_88 = arith.constant 0 : index
    %131 = vector.load %arg11[%c0_86, %c0_87, %c0_88] : memref<1x10x2xf32, #tpu.memory_space<vmem>>, vector<1x10x1xf32>
    %132 = vector.shape_cast %131 : vector<1x10x1xf32> to vector<10x1xf32>
    %133 = vector.shape_cast %130 : vector<10x1xf32> to vector<1x10x1xf32>
    tpu.vector_store %arg11[%c0_86, %c0_87, %c0_88], %133 {strides = array<i32>} : memref<1x10x2xf32, #tpu.memory_space<vmem>>, vector<1x10x1xf32>,
    %134 = vector.extract_strided_slice %113 {offsets = [0, 256], sizes = [16, 256], strides = [1, 1]} : vector<16x512xf32> to vector<16x256xf32>
    %cst_89 = arith.constant dense<0.000000e+00> : vector<16xf32>
    %135 = vector.multi_reduction <add>, %134, %cst_89 [1] : vector<16x256xf32> to vector<16xf32>
    %136 = vector.shape_cast %135 : vector<16xf32> to vector<16x1xf32>
    %cst_90 = arith.constant 3.906250e-03 : f32
    %137 = vector.broadcast %cst_90 : f32 to vector<16x1xf32>
    %138 = arith.mulf %136, %137 : vector<16x1xf32>
    %cst_91 = arith.constant dense<0.000000e+00> : vector<10x1xf32>
    %139 = tpu.matmul %122, %138, %cst_91 {dimension_numbers = #tpu.dot_dimension_numbers<[1], [0], [0], [1], [0, 0, 1, 1], [], []>} : vector<10x16xf32>, vector<16x1xf32>, vector<10x1xf32> -> vector<10x1xf32>
    %140 = arith.addf %139, %123 : vector<10x1xf32>
    %c0_92 = arith.constant 0 : index
    %c0_93 = arith.constant 0 : index
    %c1_94 = arith.constant 1 : index
    %141 = vector.load %arg11[%c0_92, %c0_93, %c1_94] : memref<1x10x2xf32, #tpu.memory_space<vmem>>, vector<1x10x1xf32>
    %142 = vector.shape_cast %141 : vector<1x10x1xf32> to vector<10x1xf32>
    %143 = vector.shape_cast %140 : vector<10x1xf32> to vector<1x10x1xf32>
    tpu.vector_store %arg11[%c0_92, %c0_93, %c1_94], %143 {strides = array<i32>} : memref<1x10x2xf32, #tpu.memory_space<vmem>>, vector<1x10x1xf32>,
    return
  }
  func.func @transform_0(%arg0: i32) -> (i32, i32, i32) {
    %c0_i32 = arith.constant 0 : i32
    %c0_i32_0 = arith.constant 0 : i32
    %c0_i32_1 = arith.constant 0 : i32
    return %arg0, %c0_i32, %c0_i32_0 : i32, i32, i32
  }
  func.func @transform_1(%arg0: i32) -> (i32, i32, i32) {
    %c0_i32 = arith.constant 0 : i32
    %c0_i32_0 = arith.constant 0 : i32
    %c0_i32_1 = arith.constant 0 : i32
    %c0_i32_2 = arith.constant 0 : i32
    return %c0_i32, %c0_i32_0, %c0_i32_1 : i32, i32, i32
  }
  func.func @transform_2(%arg0: i32) -> (i32, i32) {
    %c0_i32 = arith.constant 0 : i32
    %c0_i32_0 = arith.constant 0 : i32
    %c0_i32_1 = arith.constant 0 : i32
    return %c0_i32, %c0_i32_0 : i32, i32
  }
  func.func @transform_3(%arg0: i32) -> (i32, i32) {
    %c0_i32 = arith.constant 0 : i32
    %c0_i32_0 = arith.constant 0 : i32
    %c0_i32_1 = arith.constant 0 : i32
    return %c0_i32, %c0_i32_0 : i32, i32
  }
  func.func @transform_4(%arg0: i32) -> (i32, i32) {
    %c0_i32 = arith.constant 0 : i32
    %c0_i32_0 = arith.constant 0 : i32
    %c0_i32_1 = arith.constant 0 : i32
    return %c0_i32, %c0_i32_0 : i32, i32
  }
  func.func @transform_5(%arg0: i32) -> (i32, i32) {
    %c0_i32 = arith.constant 0 : i32
    %c0_i32_0 = arith.constant 0 : i32
    %c0_i32_1 = arith.constant 0 : i32
    return %c0_i32, %c0_i32_0 : i32, i32
  }
  func.func @transform_6(%arg0: i32) -> (i32, i32) {
    %c0_i32 = arith.constant 0 : i32
    %c0_i32_0 = arith.constant 0 : i32
    %c0_i32_1 = arith.constant 0 : i32
    return %c0_i32, %c0_i32_0 : i32, i32
  }
  func.func @transform_7(%arg0: i32) -> (i32, i32) {
    %c0_i32 = arith.constant 0 : i32
    %c0_i32_0 = arith.constant 0 : i32
    %c0_i32_1 = arith.constant 0 : i32
    return %c0_i32, %c0_i32_0 : i32, i32
  }
  func.func @transform_8(%arg0: i32) -> (i32, i32, i32) {
    %c0_i32 = arith.constant 0 : i32
    %c0_i32_0 = arith.constant 0 : i32
    %c0_i32_1 = arith.constant 0 : i32
    return %arg0, %c0_i32, %c0_i32_0 : i32, i32, i32
  }
  func.func @transform_9(%arg0: i32) -> (i32, i32, i32) {
    %c0_i32 = arith.constant 0 : i32
    %c0_i32_0 = arith.constant 0 : i32
    %c0_i32_1 = arith.constant 0 : i32
    return %arg0, %c0_i32, %c0_i32_0 : i32, i32, i32
  }
  func.func @transform_10(%arg0: i32) -> (i32, i32, i32) {
    %c0_i32 = arith.constant 0 : i32
    %c0_i32_0 = arith.constant 0 : i32
    %c0_i32_1 = arith.constant 0 : i32
    return %arg0, %c0_i32, %c0_i32_0 : i32, i32, i32
  }
}

</mosaic_0001>

<bundles_post_ra>
// kernel: feature_extractor_forward.1
= control target key start
LH: loop header
LB: loop body
LE: loop exit
PB: predicated region body
PF: predicated region fallthrough
CT: control target
= control target key end

     0   :  { %s1410_s15 = smov 16   ;;  %s1411_s16 = smov 17   ;;  %v1417_v4 = vmov 0.0   ;;  %v1418_v5 = vmov 0   ;;  %v46_v7 = vlaneseq  ;;  %vm391_vm8 = vcmask 588800   ;;  %s2133_s0 = inlined_call_operand.vmem [shape: f32[1,8,512], index: 0, kind: input, shape index: {}]   ;;  %s2134_s3 = inlined_call_operand.vmem [shape: f32[8,1], index: 3, kind: input, shape index: {}]   ;;  %s2135_s1 = inlined_call_operand.vmem [shape: f32[9,1,512], index: 1, kind: input, shape index: {}]   ;;  %s2136_s2 = inlined_call_operand.vmem [shape: f32[8,72], index: 2, kind: input, shape index: {}]   ;;  %s2137_s8 = inlined_call_operand.vmem [shape: f32[2,8,256], index: 8, kind: output, shape index: {0}]   ;;  %s2138_s5 = inlined_call_operand.vmem [shape: f32[16,1], index: 5, kind: input, shape index: {}]   ;;  %s2139_s4 = inlined_call_operand.vmem [shape: f32[16,72], index: 4, kind: input, shape index: {}]   ;;  %s2140_s9 = inlined_call_operand.vmem [shape: f32[2,16,256], index: 9, kind: output, shape index: {1}]   ;;  %s2141_s6 = inlined_call_operand.vmem [shape: f32[10,16], index: 6, kind: input, shape index: {}]   ;;  %s2142_s7 = inlined_call_operand.vmem [shape: f32[10,1], index: 7, kind: input, shape index: {}]   ;;  %s2143_s10 = inlined_call_operand.vmem [shape: f32[1,10,2], index: 10, kind: output, shape index: {2}]  }
   0x1   :  { %v1478_v0 = vld [vmem:[%s2133_s0 + $0x10] sm:$0xff]  ;;  %v1487_v1 = vld [vmem:[%s2133_s0 + $0x18] sm:$0xff]  ;;  %v1496_v2 = vld [vmem:[%s2133_s0 + $0x8] sm:$0xff]  ;;  %s1412_s23 = smov 15   ;;  %s1414_s24 = smov 127   ;;  %530 = vmatprep.mubr.f32.mxu1 %v1417_v4  ;;  %459 = vmatprep.mubr.f32.mxu0 %v1417_v4  ;;  %vm1079_vm9 = vcmask 130048  }
   0x2   :  { %83 = vrot.lane.b32.xlu1 %v1478_v0, %s1410_s15  ;;  %42 = vrot.lane.b32.xlu0 %v1478_v0, %s1411_s16  ;;  %v1501_v3 = vld [vmem:[%s2133_s0] sm:$0xff]  ;;  %s1413_s0 = smov 1   ;;  %s1415_s25 = smov 113   ;;  %v56_v8 = vshrl.u32 %v46_v7, 7  ;;  %v1564_v9 = vand.u32 127, %v46_v7  ;;  %vm1163_vm10 = vcmask 1024  }
   0x3   :  { %s1416_s26 = smov 112   ;;  %1408 = vset.pattern.permute.xlu0 %v1418_v5  ;;  %1409 = vset.pattern.permute.xlu1 %v1418_v5  ;;  %s1419_s27 = smov 111   ;;  %v37_v6 = vld [vmem:[%s2134_s3] sm:$0xff]  ;;  %v1273_v49 = vld [vmem:[%s2135_s1 + $0x8] sm:$0xf]  ;;  %vm1161_vm11 = vcmask 7168  }
   0x4   :  { %v1566_v10 = vsub.s32 3, %v56_v8  ;;  %v53_v11 = vld [vmem:[%s2135_s1] sm:$0xf]  ;;  %v1272_v12 = vld [vmem:[%s2135_s1 + $0x4] sm:$0xf]  ;;  %vm87_vm0 = vcmp.lt.s32.totalorder %v1564_v9, 16 }
   0x5   :  { %vm48_vm1 = vcmp.lt.s32.totalorder %v1564_v9, 17  ;;  %v1578_v17 = vsub.s32 2, %v56_v8  ;;  %v1580_v20 = vsub.s32 0, %v56_v8  ;;  %v1586_v23 = vsub.s32 1, %v56_v8  ;;  %v1274_v50 = vld [vmem:[%s2135_s1 + $0xc] sm:$0xf] }
   0x6   :  { %85 = vrot.lane.b32.xlu1 %v1487_v1, %s1410_s15  ;;  %44 = vrot.lane.b32.xlu0 %v1487_v1, %s1411_s16  ;;  %v70_v15 = vrot.slane %v53_v11, %v1566_v10  ;;  %v110_v16 = vrot.slane %v1272_v12, %v1566_v10  ;;  %vm127_vm2 = vcmp.lt.s32.totalorder %v1564_v9, 15  ;;  %v150_v56 = vrot.slane %v1273_v49, %v1566_v10 }
   0x7   :  { %v66_v26 = vrot.slane %v53_v11, %v1578_v17  ;;  %v58_v31 = vrot.slane %v53_v11, %v1580_v20  ;;  %v106_v32 = vrot.slane %v1272_v12, %v1578_v17  ;;  %v98_v34 = vrot.slane %v1272_v12, %v1580_v20 }
   0x8   :  { %v62_v35 = vrot.slane %v53_v11, %v1586_v23  ;;  %v102_v36 = vrot.slane %v1272_v12, %v1586_v23  ;;  %vm167_vm3 = vcmp.lt.s32.totalorder %v1564_v9, 1  ;;  %v190_v57 = vrot.slane %v1274_v50, %v1566_v10  ;;  %v1275_v11 = vld [vmem:[%s2135_s1 + $0x10] sm:$0xf] }
   0x9   :  { %v146_v5 = vrot.slane %v1273_v49, %v1578_v17  ;;  %vm234_vm4 = vcmp.lt.s32.totalorder %v1564_v9, 127  ;;  %vm274_vm5 = vcmp.lt.s32.totalorder %v1564_v9, 113  ;;  %vm314_vm6 = vcmp.lt.s32.totalorder %v1564_v9, 112 }
   0xa   :  { %40 = vrot.lane.b32.xlu1 %v1496_v2, %s1411_s16  ;;  %38 = vrot.lane.b32.xlu0 %v1501_v3, %s1411_s16  ;;  %vm354_vm7 = vcmp.lt.s32.totalorder %v1564_v9, 111  ;;  %vm1258_vm12 = vcmask 9224   ;;  %vm1256_vm13 = vcmask 15368  }
   0xe   :  { %81 = vrot.lane.b32.xlu1 %v1496_v2, %s1410_s15  ;;  %79 = vrot.lane.b32.xlu0 %v1501_v3, %s1410_s15 }
  0x12   :  { %125 = vrot.lane.b32.xlu1 %v1487_v1, %s1412_s23  ;;  %123 = vrot.lane.b32.xlu0 %v1478_v0, %s1412_s23 }
  0x16   :  { %165 = vrot.lane.b32.xlu1 %v1487_v1, %s1413_s0  ;;  %163 = vrot.lane.b32.xlu0 %v1478_v0, %s1413_s0 }
  0x1a   :  { %121 = vrot.lane.b32.xlu1 %v1496_v2, %s1412_s23  ;;  %119 = vrot.lane.b32.xlu0 %v1501_v3, %s1412_s23 }
  0x1e   :  { %161 = vrot.lane.b32.xlu1 %v1496_v2, %s1413_s0  ;;  %159 = vrot.lane.b32.xlu0 %v1501_v3, %s1413_s0 }
  0x22   :  { %232 = vrot.lane.b32.xlu1 %v1487_v1, %s1414_s24  ;;  %226 = vrot.lane.b32.xlu0 %v1501_v3, %s1414_s24 }
  0x26   :  { %230 = vrot.lane.b32.xlu1 %v1478_v0, %s1414_s24  ;;  %228 = vrot.lane.b32.xlu0 %v1496_v2, %s1414_s24 }
  0x2a   :  { %272 = vrot.lane.b32.xlu1 %v1487_v1, %s1415_s25  ;;  %266 = vrot.lane.b32.xlu0 %v1501_v3, %s1415_s25 }
  0x2e   :  { %312 = vrot.lane.b32.xlu1 %v1487_v1, %s1416_s26  ;;  %306 = vrot.lane.b32.xlu0 %v1501_v3, %s1416_s26 }
  0x32   :  { %270 = vrot.lane.b32.xlu1 %v1478_v0, %s1415_s25  ;;  %268 = vrot.lane.b32.xlu0 %v1496_v2, %s1415_s25 }
  0x36   :  { %310 = vrot.lane.b32.xlu1 %v1478_v0, %s1416_s26  ;;  %308 = vrot.lane.b32.xlu0 %v1496_v2, %s1416_s26 }
  0x3a   :  { %352 = vrot.lane.b32.xlu1 %v1487_v1, %s1419_s27  ;;  %346 = vrot.lane.b32.xlu0 %v1501_v3, %s1419_s27 }
  0x3e   :  { %350 = vrot.lane.b32.xlu1 %v1478_v0, %s1419_s27  ;;  %348 = vrot.lane.b32.xlu0 %v1496_v2, %s1419_s27 }
  0x42   :  { %388 = vperm.xlu0 %1408, %v37_v6  }
  0x74   :  { %v84_v13 = vpop.permute.xlu1 %83  ;;  %v43_v14 = vpop.permute.xlu0 %42 }
  0x78   :  { %v86_v18 = vpop.permute.xlu1 %85  ;;  %v45_v19 = vpop.permute.xlu0 %44 }
  0x79   :  { %v88_v21 = vsel %vm87_vm0, %v84_v13, %v86_v18  ;;  %v49_v22 = vsel %vm48_vm1, %v43_v14, %v45_v19 }
  0x7a   :  { %v78_v24 = vmul.f32 %v70_v15, %v49_v22  ;;  %v118_v25 = vmul.f32 %v110_v16, %v88_v21  ;;  %v1276_v15 = vld [vmem:[%s2135_s1 + $0x14] sm:$0xf]  ;;  %v182_v21 = vrot.slane %v1274_v50, %v1586_v23 }
  0x7c   :  { %v41_v27 = vpop.permute.xlu1 %40  ;;  %v39_v28 = vpop.permute.xlu0 %38  ;;  %v1342_v29 = vpack.c.bf16 %v118_v25, %v78_v24  ;;  %v217_v24 = vrot.slane %v1275_v11, %v1566_v10 }
  0x7d   :  { %v50_v30 = vsel %vm48_vm1, %v41_v27, %v43_v14  ;;  %v52_v33 = vsel %vm48_vm1, %v45_v19, %v39_v28  ;;  %v51_v37 = vsel %vm48_vm1, %v39_v28, %v41_v27  ;;  %v142_v14 = vrot.slane %v1273_v49, %v1586_v23 }
  0x7e   :  { %1343 = vmatprep.subr.bf16.mxu1 %v1342_v29  ;;  %v77_v38 = vmul.f32 %v66_v26, %v50_v30  ;;  %v75_v41 = vmul.f32 %v58_v31, %v52_v33  ;;  %v76_v47 = vmul.f32 %v62_v35, %v51_v37  ;;  %v178_v19 = vrot.slane %v1274_v50, %v1580_v20 }
  0x7f   :  { %v257_v28 = vrot.slane %v1276_v15, %v1566_v10  ;;  %v225_v37 = vmul.f32 %v217_v24, %v1487_v1  ;;  %v245_v1 = vrot.slane %v1276_v15, %v1580_v20 }
  0x80   :  { %v82_v39 = vpop.permute.xlu1 %81  ;;  %v80_v40 = vpop.permute.xlu0 %79 }
  0x81   :  { %v89_v42 = vsel %vm87_vm0, %v82_v39, %v84_v13  ;;  %v90_v43 = vsel %vm87_vm0, %v80_v40, %v82_v39  ;;  %v91_v44 = vsel %vm87_vm0, %v86_v18, %v80_v40  ;;  %v138_v13 = vrot.slane %v1273_v49, %v1580_v20 }
  0x82   :  { %v117_v45 = vmul.f32 %v106_v32, %v89_v42  ;;  %v115_v46 = vmul.f32 %v98_v34, %v91_v44  ;;  %v116_v48 = vmul.f32 %v102_v36, %v90_v43  ;;  %v186_v18 = vrot.slane %v1274_v50, %v1578_v17 }
  0x83   :  { %v213_v39 = vrot.slane %v1275_v11, %v1578_v17  ;;  %v249_v49 = vrot.slane %v1276_v15, %v1586_v23 }
  0x84   :  { %v126_v51 = vpop.permute.xlu1 %125  ;;  %v124_v52 = vpop.permute.xlu0 %123  ;;  %v1326_v53 = vpack.c.bf16 %v116_v48, %v76_v47  ;;  %v1344_v54 = vpack.c.bf16 %v117_v45, %v77_v38  ;;  %v1328_v55 = vpack.c.bf16 %v115_v46, %v75_v41  ;;  %v209_v38 = vrot.slane %v1275_v11, %v1586_v23 }
  0x85   :  { %v128_v58 = vsel %vm127_vm2, %v124_v52, %v126_v51  ;;  %v205_v45 = vrot.slane %v1275_v11, %v1580_v20  ;;  %v253_v47 = vrot.slane %v1276_v15, %v1578_v17 }
  0x86   :  { %1327 = vmatprep.subr.bf16.mxu0 %v1326_v53  ;;  %1345 = vmatpush1.bf16.msra.mxu1 %v1344_v54  ;;  %v158_v62 = vmul.f32 %v150_v56, %v128_v58  ;;  %v223_v53 = vmul.f32 %v209_v38, %v1496_v2  ;;  %v224_v54 = vmul.f32 %v213_v39, %v1478_v0  ;;  %v1277_v2 = vld [vmem:[%s2135_s1 + $0x18] sm:$0xf]  ;;  %v1278_v0 = vld [vmem:[%s2135_s1 + $0x1c] sm:$0xf] }
  0x87   :  { %1329 = vmatpush1.bf16.msra.mxu0 %v1328_v55  ;;  %v222_v55 = vmul.f32 %v205_v45, %v1501_v3 }
  0x88   :  { %v166_v59 = vpop.permute.xlu1 %165  ;;  %v164_v60 = vpop.permute.xlu0 %163 }
  0x89   :  { %v168_v61 = vsel %vm167_vm3, %v164_v60, %v166_v59 }
  0x8a   :  { %v198_v63 = vmul.f32 %v190_v57, %v168_v61 }
  0x8c   :  { %v122_v6 = vpop.permute.xlu1 %121  ;;  %v120_v7 = vpop.permute.xlu0 %119  ;;  %v1346_v8 = vpack.c.bf16 %v198_v63, %v158_v62 }
  0x8d   :  { %v129_v12 = vsel %vm127_vm2, %v122_v6, %v124_v52  ;;  %v131_v16 = vsel %vm127_vm2, %v126_v51, %v120_v7  ;;  %v130_v22 = vsel %vm127_vm2, %v120_v7, %v122_v6  ;;  %v297_v7 = vrot.slane %v1277_v2, %v1566_v10 }
  0x8e   :  { %1347 = vmatprep.subr.bf16.mxu1 %v1346_v8  ;;  %v157_v25 = vmul.f32 %v146_v5, %v129_v12  ;;  %v155_v29 = vmul.f32 %v138_v13, %v131_v16  ;;  %v156_v33 = vmul.f32 %v142_v14, %v130_v22  ;;  %v337_v8 = vrot.slane %v1278_v0, %v1566_v10 }
  0x90   :  { %v162_v26 = vpop.permute.xlu1 %161  ;;  %v160_v27 = vpop.permute.xlu0 %159 }
  0x91   :  { %v169_v30 = vsel %vm167_vm3, %v162_v26, %v164_v60  ;;  %v170_v31 = vsel %vm167_vm3, %v160_v27, %v162_v26  ;;  %v171_v32 = vsel %vm167_vm3, %v166_v59, %v160_v27  ;;  %v289_v26 = vrot.slane %v1277_v2, %v1586_v23  ;;  %v1279_v27 = vld [vmem:[%s2135_s1 + $0x20] sm:$0xf] }
  0x92   :  { %v197_v34 = vmul.f32 %v186_v18, %v169_v30  ;;  %v195_v35 = vmul.f32 %v178_v19, %v171_v32  ;;  %v196_v36 = vmul.f32 %v182_v21, %v170_v31  ;;  %v293_v18 = vrot.slane %v1277_v2, %v1578_v17 }
  0x93   :  { %v325_v30 = vrot.slane %v1278_v0, %v1580_v20  ;;  %v329_v31 = vrot.slane %v1278_v0, %v1586_v23 }
  0x94   :  { %v233_v40 = vpop.permute.xlu1 %232  ;;  %v227_v41 = vpop.permute.xlu0 %226  ;;  %v1330_v42 = vpack.c.bf16 %v196_v36, %v156_v33  ;;  %v1348_v43 = vpack.c.bf16 %v197_v34, %v157_v25  ;;  %v1332_v44 = vpack.c.bf16 %v195_v35, %v155_v29  ;;  %v285_v25 = vrot.slane %v1277_v2, %v1580_v20  ;;  %v36_v2 = vld [vmem:[%s2136_s2] sm:$0xff] }
  0x95   :  { %v238_v46 = vsel %vm234_vm4, %v233_v40, %v227_v41  ;;  %v333_v29 = vrot.slane %v1278_v0, %v1578_v17  ;;  %v377_v36 = vrot.slane %v1279_v27, %v1566_v10 }
  0x96   :  { %v265_v48 = vmul.f32 %v257_v28, %v238_v46  ;;  %1331 = vmatprep.subr.bf16.mxu0 %v1330_v42  ;;  %1349 = vmatpush1.bf16.msra.mxu1 %v1348_v43 }
  0x97   :  { %1333 = vmatpush1.bf16.msra.mxu0 %v1332_v44 }
  0x98   :  { %v231_v50 = vpop.permute.xlu1 %230  ;;  %v229_v51 = vpop.permute.xlu0 %228  ;;  %v1350_v52 = vpack.c.bf16 %v265_v48, %v225_v37 }
  0x99   :  { %v235_v56 = vsel %vm234_vm4, %v231_v50, %v233_v40  ;;  %v236_v57 = vsel %vm234_vm4, %v229_v51, %v231_v50  ;;  %v237_v58 = vsel %vm234_vm4, %v227_v41, %v229_v51  ;;  %v373_v50 = vrot.slane %v1279_v27, %v1578_v17 }
  0x9a   :  { %v264_v59 = vmul.f32 %v253_v47, %v235_v56  ;;  %v262_v60 = vmul.f32 %v245_v1, %v237_v58  ;;  %v263_v61 = vmul.f32 %v249_v49, %v236_v57  ;;  %1351 = vmatprep.subr.bf16.mxu1 %v1350_v52  ;;  %v365_v52 = vrot.slane %v1279_v27, %v1580_v20 }
  0x9c   :  { %v273_v3 = vpop.permute.xlu1 %272  ;;  %v267_v62 = vpop.permute.xlu0 %266  ;;  %v1334_v63 = vpack.c.bf16 %v263_v61, %v223_v53  ;;  %v1352_v5 = vpack.c.bf16 %v264_v59, %v224_v54  ;;  %v1336_v6 = vpack.c.bf16 %v262_v60, %v222_v55  ;;  %v369_v53 = vrot.slane %v1279_v27, %v1586_v23  ;;  %v1821_v27 = vld [vmem:[%s2135_s1] sm:$0xf] }
  0x9d   :  { %v278_v11 = vsel %vm274_vm5, %v273_v3, %v267_v62 }
  0x9e   :  { %1335 = vmatprep.subr.bf16.mxu0 %v1334_v63  ;;  %1353 = vmatpush1.bf16.msra.mxu1 %v1352_v5  ;;  %v305_v15 = vmul.f32 %v297_v7, %v278_v11 }
  0x9f   :  { %1337 = vmatpush1.bf16.msra.mxu0 %v1336_v6 }
  0xa0   :  { %v313_v12 = vpop.permute.xlu1 %312  ;;  %v307_v13 = vpop.permute.xlu0 %306 }
  0xa1   :  { %v318_v14 = vsel %vm314_vm6, %v313_v12, %v307_v13 }
  0xa2   :  { %v345_v16 = vmul.f32 %v337_v8, %v318_v14 }
  0xa4   :  { %v271_v19 = vpop.permute.xlu1 %270  ;;  %v269_v21 = vpop.permute.xlu0 %268  ;;  %v1354_v22 = vpack.c.bf16 %v345_v16, %v305_v15  ;;  %v548_v16 = vld [vmem:[%s2138_s5] sm:$0xff] }
  0xa5   :  { %v275_v24 = vsel %vm274_vm5, %v271_v19, %v273_v3  ;;  %v277_v28 = vsel %vm274_vm5, %v267_v62, %v269_v21  ;;  %v276_v32 = vsel %vm274_vm5, %v269_v21, %v271_v19 }
  0xa6   :  { %1355 = vmatprep.subr.bf16.mxu1 %v1354_v22  ;;  %v304_v33 = vmul.f32 %v293_v18, %v275_v24  ;;  %v302_v37 = vmul.f32 %v285_v25, %v277_v28  ;;  %v303_v41 = vmul.f32 %v289_v26, %v276_v32  ;;  %v549_v18 = vld [vmem:[%s2138_s5 + $0x8] sm:$0xff]  ;;  %v1826_v28 = vld [vmem:[%s2135_s1 + $0x4] sm:$0xf] }
  0xa7   :  { %v617_v32 = vrot.slane %v1826_v28, %v1566_v10 }
  0xa8   :  { %v311_v34 = vpop.permute.xlu1 %310  ;;  %v309_v35 = vpop.permute.xlu0 %308 }
  0xa9   :  { %v315_v38 = vsel %vm314_vm6, %v311_v34, %v313_v12  ;;  %v316_v39 = vsel %vm314_vm6, %v309_v35, %v311_v34  ;;  %v317_v40 = vsel %vm314_vm6, %v307_v13, %v309_v35 }
  0xaa   :  { %v344_v42 = vmul.f32 %v333_v29, %v315_v38  ;;  %v342_v43 = vmul.f32 %v325_v30, %v317_v40  ;;  %v343_v44 = vmul.f32 %v329_v31, %v316_v39  ;;  %v579_v31 = vrot.slane %v1821_v27, %v1566_v10 }
  0xab   :  { %v613_v39 = vrot.slane %v1826_v28, %v1578_v17  ;;  %v575_v40 = vrot.slane %v1821_v27, %v1578_v17 }
  0xac   :  { %v353_v45 = vpop.permute.xlu1 %352  ;;  %v347_v46 = vpop.permute.xlu0 %346  ;;  %v1338_v47 = vpack.c.bf16 %v343_v44, %v303_v41  ;;  %v1356_v48 = vpack.c.bf16 %v344_v42, %v304_v33  ;;  %v1340_v1 = vpack.c.bf16 %v342_v43, %v302_v37 }
  0xad   :  { %v358_v49 = vsel %vm354_vm7, %v353_v45, %v347_v46 }
  0xae   :  { %v385_v51 = vmul.f32 %v377_v36, %v358_v49  ;;  %1339 = vmatprep.subr.bf16.mxu0 %v1338_v47  ;;  %1357 = vmatpush1.bf16.msra.mxu1 %v1356_v48  ;;  %v1863_v48 = vld [vmem:[%s2135_s1 + $0x8] sm:$0xf] }
  0xaf   :  { %1341 = vmatpush1.bf16.msra.mxu0 %v1340_v1  ;;  %v1868_v1 = vld [vmem:[%s2135_s1 + $0xc] sm:$0xf] }
  0xb0   :  { %v351_v54 = vpop.permute.xlu1 %350  ;;  %482 = vmatprep.subr.mxu1 %v385_v51  ;;  %v349_v55 = vpop.permute.xlu0 %348 }
  0xb1   :  { %v355_v56 = vsel %vm354_vm7, %v351_v54, %v353_v45  ;;  %v356_v57 = vsel %vm354_vm7, %v349_v55, %v351_v54  ;;  %v357_v58 = vsel %vm354_vm7, %v347_v46, %v349_v55 }
  0xb2   :  { %v384_v59 = vmul.f32 %v373_v50, %v355_v56  ;;  %v382_v60 = vmul.f32 %v365_v52, %v357_v58  ;;  %v383_v61 = vmul.f32 %v369_v53, %v356_v57  ;;  %v655_v52 = vrot.slane %v1863_v48, %v1566_v10  ;;  %v1889_v58 = vld [vmem:[%s2135_s1 + $0x10] sm:$0xf] }
  0xb3   :  { %v693_v53 = vrot.slane %v1868_v1, %v1566_v10 }
  0xb4   :  { %411 = vmatprep.subr.mxu0 %v383_v61  ;;  %483 = vmatpush1.msra.mxu1 %v384_v59 }
  0xb5   :  { %412 = vmatpush1.msra.mxu0 %v382_v60  ;;  %1281 = vmatmul.mubr.msk.f32.vlgmr.msra.gmra.mrb[0].mxu1 %vm391_vm8, %v36_v2  ;;  %v651_v60 = vrot.slane %v1863_v48, %v1578_v17 }
  0xb6   :  { %1280 = vmatmul.mubr.msk.f32.vlgmr.msra.gmra.mrb[0].mxu0 %vm391_vm8, %v36_v2  ;;  %1037 = vmatprep.mubr.f32.mxu1 %v1417_v4  ;;  %v689_v2 = vrot.slane %v1868_v1, %v1578_v17 }
  0xb7   :  { %960 = vmatprep.mubr.f32.mxu0 %v1417_v4 }
  0xc1   :  { %v389_v0 = vpop.permute.xlu0 %388 }
 0x188   :  { %v532_v3 = vpop.f32.mrb[0].mxu1 }
 0x189   :  { %v533_v62 = vadd.f32 %v532_v3, %v389_v0  ;;  %v461_v63 = vpop.f32.mrb[0].mxu0  ;;  %v534_v5 = vpop.f32.mrb[1].mxu1 }
 0x18a   :  { %v462_v6 = vadd.f32 %v461_v63, %v389_v0  ;;  %v535_v7 = vadd.f32 %v534_v5, %v389_v0  ;;  %v463_v8 = vpop.f32.mrb[1].mxu0 }
 0x18b   :  { %v1720_v11 = vmax.f32 %v533_v62, 0.0  ;;  %v464_v12 = vadd.f32 %v463_v8, %v389_v0  ;;  %v1898_v0 = vld [vmem:[%s2135_s1 + $0x1c] sm:$0xf]  ;;  %v1906_v62 = vld [vmem:[%s2135_s1 + $0x14] sm:$0xf]  ;;  %v719_v8 = vrot.slane %v1889_v58, %v1566_v10 }
 0x18c   :  { %v1722_v13 = vmax.f32 %v462_v6, 0.0  ;;  %v1724_v14 = vmax.f32 %v535_v7, 0.0  ;;  %v715_v7 = vrot.slane %v1889_v58, %v1578_v17 }
 0x18d   :  { %1282 = vst [vmem:[%s2137_s8 + $0x10] sm:$0xff] %v1720_v11  ;;  %v1730_v15 = vmax.f32 %v464_v12, 0.0  ;;  %592 = vrot.lane.b32.xlu0 %v1720_v11, %s1410_s15  ;;  %554 = vrot.lane.b32.xlu1 %v1720_v11, %s1411_s16  ;;  %v1917_v12 = vld [vmem:[%s2135_s1 + $0x18] sm:$0xf] }
 0x18e   :  { %541 = vst [vmem:[%s2137_s8] sm:$0xff] %v1722_v13  ;;  %1283 = vst [vmem:[%s2137_s8 + $0x18] sm:$0xff] %v1724_v14 }
 0x18f   :  { %542 = vst [vmem:[%s2137_s8 + $0x8] sm:$0xff] %v1730_v15 }
 0x191   :  { %630 = vrot.lane.b32.xlu0 %v1720_v11, %s1412_s23  ;;  %766 = vrot.lane.b32.xlu1 %v1722_v13, %s1415_s25 }
 0x195   :  { %668 = vrot.lane.b32.xlu0 %v1720_v11, %s1413_s0  ;;  %804 = vrot.lane.b32.xlu1 %v1722_v13, %s1416_s26 }
 0x199   :  { %556 = vrot.lane.b32.xlu1 %v1724_v14, %s1411_s16  ;;  %728 = vrot.lane.b32.xlu0 %v1722_v13, %s1414_s24 }
 0x19d   :  { %594 = vrot.lane.b32.xlu1 %v1724_v14, %s1410_s15  ;;  %732 = vrot.lane.b32.xlu0 %v1720_v11, %s1414_s24 }
 0x1a1   :  { %590 = vrot.lane.b32.xlu1 %v1730_v15, %s1410_s15  ;;  %552 = vrot.lane.b32.xlu0 %v1730_v15, %s1411_s16 }
 0x1a5   :  { %632 = vrot.lane.b32.xlu1 %v1724_v14, %s1412_s23  ;;  %628 = vrot.lane.b32.xlu0 %v1730_v15, %s1412_s23 }
 0x1a9   :  { %670 = vrot.lane.b32.xlu1 %v1724_v14, %s1413_s0  ;;  %772 = vrot.lane.b32.xlu0 %v1724_v14, %s1415_s25 }
 0x1ad   :  { %666 = vrot.lane.b32.xlu1 %v1730_v15, %s1413_s0  ;;  %810 = vrot.lane.b32.xlu0 %v1724_v14, %s1416_s26 }
 0x1b1   :  { %734 = vrot.lane.b32.xlu1 %v1724_v14, %s1414_s24  ;;  %808 = vrot.lane.b32.xlu0 %v1720_v11, %s1416_s26 }
 0x1b5   :  { %770 = vrot.lane.b32.xlu1 %v1720_v11, %s1415_s25  ;;  %848 = vrot.lane.b32.xlu0 %v1724_v14, %s1419_s27 }
 0x1b9   :  { %842 = vrot.lane.b32.xlu1 %v1722_v13, %s1419_s27  ;;  %550 = vrot.lane.b32.xlu0 %v1722_v13, %s1411_s16 }
 0x1bd   :  { %846 = vrot.lane.b32.xlu1 %v1720_v11, %s1419_s27  ;;  %626 = vrot.lane.b32.xlu0 %v1722_v13, %s1412_s23 }
 0x1c1   :  { %588 = vrot.lane.b32.xlu1 %v1722_v13, %s1410_s15  ;;  %730 = vrot.lane.b32.xlu0 %v1730_v15, %s1414_s24 }
 0x1c5   :  { %664 = vrot.lane.b32.xlu1 %v1722_v13, %s1413_s0  ;;  %806 = vrot.lane.b32.xlu0 %v1730_v15, %s1416_s26 }
 0x1c9   :  { %768 = vrot.lane.b32.xlu1 %v1730_v15, %s1415_s25  ;;  %882 = vperm.xlu0 %1408, %v548_v16  }
 0x1cd   :  { %844 = vrot.lane.b32.xlu1 %v1730_v15, %s1419_s27 }
 0x1d1   :  { %887 = vperm.xlu1 %1409, %v549_v18   ;;  %v833_v18 = vrot.slane %v1898_v0, %v1566_v10 }
 0x1ff   :  { %v593_v19 = vpop.permute.xlu0 %592  ;;  %v555_v21 = vpop.permute.xlu1 %554 }
 0x203   :  { %v631_v22 = vpop.permute.xlu0 %630  ;;  %v1814_v24 = vpop.permute.xlu1 %766 }
 0x207   :  { %v669_v25 = vpop.permute.xlu0 %668  ;;  %v1816_v26 = vpop.permute.xlu1 %804 }
 0x20b   :  { %v1828_v29 = vpop.permute.xlu1 %556  ;;  %v1830_v30 = vpop.permute.xlu0 %728 }
 0x20c   :  { %v558_v33 = vsel %vm48_vm1, %v555_v21, %v1828_v29 }
 0x20d   :  { %v587_v37 = vmul.f32 %v579_v31, %v558_v33  ;;  %v757_v31 = vrot.slane %v1906_v62, %v1566_v10  ;;  %v795_v33 = vrot.slane %v1917_v12, %v1566_v10 }
 0x20f   :  { %v1839_v34 = vpop.permute.xlu1 %594  ;;  %v1841_v35 = vpop.permute.xlu0 %732 }
 0x210   :  { %v596_v36 = vsel %vm87_vm0, %v593_v19, %v1839_v34 }
 0x211   :  { %v625_v38 = vmul.f32 %v617_v32, %v596_v36  ;;  %v726_v36 = vmul.f32 %v715_v7, %v1720_v11  ;;  %v829_v11 = vrot.slane %v1898_v0, %v1578_v17 }
 0x213   :  { %v1850_v41 = vpop.permute.xlu1 %590  ;;  %v1852_v42 = vpop.permute.xlu0 %552  ;;  %v1374_v43 = vpack.c.bf16 %v625_v38, %v587_v37 }
 0x214   :  { %v597_v44 = vsel %vm87_vm0, %v1850_v41, %v593_v19  ;;  %v559_v45 = vsel %vm48_vm1, %v1852_v42, %v555_v21 }
 0x215   :  { %v624_v46 = vmul.f32 %v613_v39, %v597_v44  ;;  %v586_v47 = vmul.f32 %v575_v40, %v559_v45  ;;  %1375 = vmatprep.subr.bf16.mxu1 %v1374_v43  ;;  %v727_v39 = vmul.f32 %v719_v8, %v1724_v14  ;;  %v791_v14 = vrot.slane %v1917_v12, %v1578_v17 }
 0x217   :  { %v1376_v49 = vpack.c.bf16 %v624_v46, %v586_v47  ;;  %v1870_v50 = vpop.permute.xlu1 %632  ;;  %v1872_v51 = vpop.permute.xlu0 %628 }
 0x218   :  { %v634_v54 = vsel %vm127_vm2, %v631_v22, %v1870_v50  ;;  %v635_v3 = vsel %vm127_vm2, %v1872_v51, %v631_v22  ;;  %v753_v22 = vrot.slane %v1906_v62, %v1578_v17 }
 0x219   :  { %1377 = vmatpush1.bf16.msra.mxu1 %v1376_v49  ;;  %v663_v59 = vmul.f32 %v655_v52, %v634_v54  ;;  %v662_v19 = vmul.f32 %v651_v60, %v635_v3  ;;  %v1956_v52 = vld [vmem:[%s2135_s1 + $0x20] sm:$0xf] }
 0x21b   :  { %v1881_v55 = vpop.permute.xlu1 %670  ;;  %v773_v56 = vpop.permute.xlu0 %772 }
 0x21c   :  { %v672_v57 = vsel %vm167_vm3, %v669_v25, %v1881_v55  ;;  %v777_v40 = vsel %vm274_vm5, %v773_v56, %v1814_v24 }
 0x21d   :  { %v701_v61 = vmul.f32 %v693_v53, %v672_v57  ;;  %v803_v53 = vmul.f32 %v795_v33, %v777_v40  ;;  %v605_v33 = vrot.slane %v1826_v28, %v1580_v20  ;;  %v647_v40 = vrot.slane %v1863_v48, %v1586_v23 }
 0x21f   :  { %v1908_v63 = vpop.permute.xlu1 %666  ;;  %v811_v5 = vpop.permute.xlu0 %810  ;;  %v1378_v6 = vpack.c.bf16 %v701_v61, %v663_v59 }
 0x220   :  { %v673_v16 = vsel %vm167_vm3, %v1908_v63, %v669_v25  ;;  %v815_v32 = vsel %vm314_vm6, %v811_v5, %v1816_v26 }
 0x221   :  { %v700_v21 = vmul.f32 %v689_v2, %v673_v16  ;;  %1379 = vmatprep.subr.bf16.mxu1 %v1378_v6  ;;  %v841_v45 = vmul.f32 %v833_v18, %v815_v32 }
 0x223   :  { %v1380_v25 = vpack.c.bf16 %v700_v21, %v662_v19  ;;  %v735_v37 = vpop.permute.xlu1 %734  ;;  %v1934_v38 = vpop.permute.xlu0 %808  ;;  %v1386_v6 = vpack.c.bf16 %v841_v45, %v803_v53  ;;  %v711_v53 = vrot.slane %v1889_v58, %v1586_v23 }
 0x224   :  { %v736_v43 = vsel %vm234_vm4, %v1841_v35, %v735_v37  ;;  %v739_v44 = vsel %vm234_vm4, %v735_v37, %v1830_v30  ;;  %v812_v49 = vsel %vm314_vm6, %v1934_v38, %v811_v5  ;;  %v871_v5 = vrot.slane %v1956_v52, %v1566_v10 }
 0x225   :  { %v764_v46 = vmul.f32 %v753_v22, %v736_v43  ;;  %v765_v47 = vmul.f32 %v757_v31, %v739_v44  ;;  %1381 = vmatpush1.bf16.msra.mxu1 %v1380_v25  ;;  %v840_v2 = vmul.f32 %v829_v11, %v812_v49  ;;  %v567_v22 = vrot.slane %v1821_v27, %v1580_v20 }
 0x226   :  { %v571_v31 = vrot.slane %v1821_v27, %v1586_v23  ;;  %v609_v37 = vrot.slane %v1826_v28, %v1586_v23  ;;  %v1994_v27 = vld [vmem:[%s2139_s4] sm:$0xff]  ;;  %v681_v28 = vrot.slane %v1868_v1, %v1580_v20  ;;  %v685_v44 = vrot.slane %v1868_v1, %v1586_v23 }
 0x227   :  { %v1384_v54 = vpack.c.bf16 %v764_v46, %v726_v36  ;;  %v1958_v57 = vpop.permute.xlu1 %770  ;;  %v849_v59 = vpop.permute.xlu0 %848  ;;  %v1382_v60 = vpack.c.bf16 %v765_v47, %v727_v39  ;;  %v643_v39 = vrot.slane %v1863_v48, %v1580_v20 }
 0x228   :  { %v774_v61 = vsel %vm274_vm5, %v1958_v57, %v773_v56  ;;  %v867_v56 = vrot.slane %v1956_v52, %v1578_v17 }
 0x229   :  { %v802_v3 = vmul.f32 %v791_v14, %v774_v61  ;;  %1383 = vmatprep.subr.bf16.mxu1 %v1382_v60  ;;  %v787_v60 = vrot.slane %v1917_v12, %v1586_v23 }
 0x22a   :  { %1385 = vmatpush1.bf16.msra.mxu1 %v1384_v54  ;;  %v745_v54 = vrot.slane %v1906_v62, %v1580_v20 }
 0x22b   :  { %v1388_v7 = vpack.c.bf16 %v840_v2, %v802_v3  ;;  %v1965_v8 = vpop.permute.xlu1 %842  ;;  %1387 = vmatprep.subr.bf16.mxu1 %v1386_v6  ;;  %v551_v16 = vpop.permute.xlu0 %550 }
 0x22c   :  { %v853_v18 = vsel %vm354_vm7, %v849_v59, %v1965_v8  ;;  %v560_v17 = vsel %vm48_vm1, %v551_v16, %v1852_v42  ;;  %v561_v25 = vsel %vm48_vm1, %v1828_v29, %v551_v16  ;;  %v749_v29 = vrot.slane %v1906_v62, %v1586_v23 }
 0x22d   :  { %v879_v19 = vmul.f32 %v871_v5, %v853_v18  ;;  %v584_v11 = vmul.f32 %v567_v22, %v561_v25  ;;  %v585_v45 = vmul.f32 %v571_v31, %v560_v17  ;;  %v707_v18 = vrot.slane %v1889_v58, %v1580_v20 }
 0x22e   :  { %1389 = vmatpush1.bf16.msra.mxu1 %v1388_v7  ;;  %v783_v31 = vrot.slane %v1917_v12, %v1580_v20  ;;  %v821_v25 = vrot.slane %v1898_v0, %v1580_v20 }
 0x22f   :  { %v1972_v21 = vpop.permute.xlu1 %846  ;;  %989 = vmatprep.subr.mxu1 %v879_v19  ;;  %v627_v10 = vpop.permute.xlu0 %626  ;;  %v825_v19 = vrot.slane %v1898_v0, %v1586_v23 }
 0x230   :  { %v850_v32 = vsel %vm354_vm7, %v1972_v21, %v849_v59  ;;  %v636_v47 = vsel %vm127_vm2, %v627_v10, %v1872_v51  ;;  %v637_v1 = vsel %vm127_vm2, %v1870_v50, %v627_v10  ;;  %v725_v10 = vmul.f32 %v711_v53, %v1730_v15 }
 0x231   :  { %v878_v36 = vmul.f32 %v867_v56, %v850_v32  ;;  %v660_v61 = vmul.f32 %v643_v39, %v637_v1  ;;  %v661_v2 = vmul.f32 %v647_v40, %v636_v47  ;;  %v724_v15 = vmul.f32 %v707_v18, %v1722_v13 }
 0x233   :  { %v589_v42 = vpop.permute.xlu1 %588  ;;  %990 = vmatpush1.msra.mxu1 %v878_v36  ;;  %v731_v43 = vpop.permute.xlu0 %730 }
 0x234   :  { %v598_v46 = vsel %vm87_vm0, %v589_v42, %v1850_v41  ;;  %v599_v48 = vsel %vm87_vm0, %v1839_v34, %v589_v42  ;;  %1294 = vmatmul.mubr.msk.f32.vlgmr.msra.gmra.mrb[2].mxu1 %vm391_vm8, %v1994_v27  ;;  %v547_v41 = vld [vmem:[%s2139_s4 + $0x8] sm:$0xff]  ;;  %v737_v34 = vsel %vm234_vm4, %v731_v43, %v1841_v35  ;;  %v738_v62 = vsel %vm234_vm4, %v1830_v30, %v731_v43 }
 0x235   :  { %v622_v14 = vmul.f32 %v605_v33, %v599_v48  ;;  %v623_v49 = vmul.f32 %v609_v37, %v598_v46  ;;  %1043 = vmatprep.mubr.f32.mxu1 %v1417_v4  ;;  %v763_v5 = vmul.f32 %v749_v29, %v737_v34  ;;  %v762_v22 = vmul.f32 %v745_v54, %v738_v62 }
 0x237   :  { %v1360_v51 = vpack.c.bf16 %v622_v14, %v584_v11  ;;  %v665_v50 = vpop.permute.xlu1 %664  ;;  %v1358_v59 = vpack.c.bf16 %v623_v49, %v585_v45  ;;  %v807_v16 = vpop.permute.xlu0 %806  ;;  %v1366_v17 = vpack.c.bf16 %v763_v5, %v725_v10 }
 0x238   :  { %v674_v3 = vsel %vm167_vm3, %v665_v50, %v1908_v63  ;;  %v675_v35 = vsel %vm167_vm3, %v1881_v55, %v665_v50  ;;  %1295 = vmatmul.mubr.msk.f32.gmra.mrb[4].mxu1 %vm391_vm8, %v547_v41  ;;  %v813_v30 = vsel %vm314_vm6, %v807_v16, %v1934_v38  ;;  %v814_v12 = vsel %vm314_vm6, %v1816_v26, %v807_v16 }
 0x239   :  { %v698_v6 = vmul.f32 %v681_v28, %v675_v35  ;;  %v699_v7 = vmul.f32 %v685_v44, %v674_v3  ;;  %1359 = vmatprep.subr.bf16.mxu0 %v1358_v59  ;;  %v839_v38 = vmul.f32 %v825_v19, %v813_v30  ;;  %v838_v40 = vmul.f32 %v821_v25, %v814_v12  ;;  %v1067_v35 = vld [vmem:[%s2141_s6] sm:$0xff]  ;;  %v1070_v30 = vld [vmem:[%s2142_s7 + $0x8] sm:$0x3] }
 0x23a   :  { %1361 = vmatpush1.bf16.msra.mxu0 %v1360_v51  ;;  %v859_v26 = vrot.slane %v1956_v52, %v1580_v20  ;;  %1323 = vmatprep.mubr.msk.f32.mxu1 %vm1079_vm9, %v1067_v35 }
 0x23b   :  { %v1364_v63 = vpack.c.bf16 %v698_v6, %v660_v61  ;;  %v769_v55 = vpop.permute.xlu1 %768  ;;  %v1362_v56 = vpack.c.bf16 %v699_v7, %v661_v2 }
 0x23c   :  { %v775_v58 = vsel %vm274_vm5, %v769_v55, %v1958_v57  ;;  %v776_v32 = vsel %vm274_vm5, %v1814_v24, %v769_v55  ;;  %v1368_v57 = vpack.c.bf16 %v762_v22, %v724_v15  ;;  %v863_v24 = vrot.slane %v1956_v52, %v1586_v23 }
 0x23d   :  { %v801_v33 = vmul.f32 %v787_v60, %v775_v58  ;;  %1363 = vmatprep.subr.bf16.mxu0 %v1362_v56  ;;  %v800_v37 = vmul.f32 %v783_v31, %v776_v32  ;;  %v1069_v31 = vld [vmem:[%s2142_s7] sm:$0xff] }
 0x23e   :  { %1365 = vmatpush1.bf16.msra.mxu0 %v1364_v63  ;;  %v1068_v63 = vld [vmem:[%s2141_s6 + $0x8] sm:$0x3] }
 0x23f   :  { %v845_v36 = vpop.permute.xlu1 %844  ;;  %1367 = vmatprep.subr.bf16.mxu0 %v1366_v17  ;;  %v1370_v39 = vpack.c.bf16 %v839_v38, %v801_v33  ;;  %v1372_v0 = vpack.c.bf16 %v838_v40, %v800_v37 }
 0x240   :  { %v851_v13 = vsel %vm354_vm7, %v845_v36, %v1972_v21  ;;  %v852_v42 = vsel %vm354_vm7, %v1965_v8, %v845_v36 }
 0x241   :  { %v877_v29 = vmul.f32 %v863_v24, %v851_v13  ;;  %v876_v23 = vmul.f32 %v859_v26, %v852_v42 }
 0x242   :  { %1369 = vmatpush1.bf16.msra.mxu0 %v1368_v57 }
 0x243   :  { %1371 = vmatprep.subr.bf16.mxu0 %v1370_v39 }
 0x246   :  { %1373 = vmatpush1.bf16.msra.mxu0 %v1372_v0 }
 0x247   :  { %912 = vmatprep.subr.mxu0 %v877_v29 }
 0x248   :  { %v883_v21 = vpop.permute.xlu0 %882 }
 0x24a   :  { %913 = vmatpush1.msra.mxu0 %v876_v23 }
 0x24b   :  { %1292 = vmatmul.mubr.msk.f32.vlgmr.msra.gmra.mrb[2].mxu0 %vm391_vm8, %v1994_v27 }
 0x24c   :  { %966 = vmatprep.mubr.f32.mxu0 %v1417_v4 }
 0x24f   :  { %1293 = vmatmul.mubr.msk.f32.gmra.mrb[4].mxu0 %vm391_vm8, %v547_v41 }
 0x250   :  { %v888_v44 = vpop.permute.xlu1 %887  ;;  %1316 = vmatprep.mubr.msk.f32.mxu0 %vm1079_vm9, %v1067_v35 }
 0x307   :  { %v1039_v43 = vpop.f32.mrb[2].mxu1 }
 0x308   :  { %v1040_v28 = vadd.f32 %v1039_v43, %v883_v21  ;;  %v1041_v20 = vpop.f32.mrb[3].mxu1 }
 0x309   :  { %v1042_v52 = vadd.f32 %v1041_v20, %v883_v21 }
 0x30a   :  { %v1052_v9 = vmax.f32 %v1040_v28, 0.0 }
 0x30b   :  { %v1053_v8 = vmax.f32 %v1042_v52, 0.0  ;;  %v1045_v11 = vpop.f32.mrb[4].mxu1 }
 0x30c   :  { %1296 = vst [vmem:[%s2140_s9 + $0x20] sm:$0xff] %v1052_v9  ;;  %v1046_v45 = vadd.f32 %v1045_v11, %v888_v44  ;;  %v1047_v46 = vpop.f32.mrb[5].mxu1 }
 0x30d   :  { %1297 = vst [vmem:[%s2140_s9 + $0x28] sm:$0xff] %v1053_v8  ;;  %v1048_v4 = vadd.f32 %v1047_v46, %v888_v44  ;;  %v1165_v27 = vadd.f32 %v1053_v8, %v1052_v9 }
 0x30e   :  { %v1056_v48 = vmax.f32 %v1046_v45, 0.0 }
 0x30f   :  { %v1057_v47 = vmax.f32 %v1048_v4, 0.0  ;;  %1166 = vadd.xlane.f32.xlu0 %v1165_v27 }
 0x310   :  { %1298 = vst [vmem:[%s2140_s9 + $0x30] sm:$0xff] %v1056_v48 }
 0x311   :  { %1299 = vst [vmem:[%s2140_s9 + $0x38] sm:$0xff] %v1057_v47  ;;  %v1168_v1 = vadd.f32 %v1057_v47, %v1056_v48 }
 0x313   :  { %1169 = vadd.xlane.f32.xlu1 %v1168_v1 }
 0x31e   :  { %v962_v14 = vpop.f32.mrb[2].mxu0 }
 0x31f   :  { %v963_v49 = vadd.f32 %v962_v14, %v883_v21  ;;  %v964_v41 = vpop.f32.mrb[3].mxu0 }
 0x320   :  { %v965_v34 = vadd.f32 %v964_v41, %v883_v21 }
 0x321   :  { %v1050_v53 = vmax.f32 %v963_v49, 0.0 }
 0x322   :  { %v1051_v51 = vmax.f32 %v965_v34, 0.0  ;;  %v968_v54 = vpop.f32.mrb[4].mxu0 }
 0x323   :  { %1058 = vst [vmem:[%s2140_s9] sm:$0xff] %v1050_v53  ;;  %v969_v50 = vadd.f32 %v968_v54, %v888_v44  ;;  %v970_v59 = vpop.f32.mrb[5].mxu0 }
 0x324   :  { %1059 = vst [vmem:[%s2140_s9 + $0x8] sm:$0xff] %v1051_v51  ;;  %v971_v60 = vadd.f32 %v970_v59, %v888_v44  ;;  %v1071_v61 = vadd.f32 %v1051_v51, %v1050_v53 }
 0x325   :  { %v1054_v2 = vmax.f32 %v969_v50, 0.0 }
 0x326   :  { %v1055_v3 = vmax.f32 %v971_v60, 0.0  ;;  %1072 = vadd.xlane.f32.xlu0 %v1071_v61 }
 0x327   :  { %1060 = vst [vmem:[%s2140_s9 + $0x10] sm:$0xff] %v1054_v2 }
 0x328   :  { %1061 = vst [vmem:[%s2140_s9 + $0x18] sm:$0xff] %v1055_v3  ;;  %v1074_v62 = vadd.f32 %v1055_v3, %v1054_v2 }
 0x32a   :  { %1075 = vadd.xlane.f32.xlu0 %v1074_v62 }
 0x39c   :  { %v1167_v5 = vpop.xlane.xlu0 %1166 }
 0x39d   :  { %v1171_v7 = vmul.f32 0.00390625, %v1167_v5 }
 0x3a0   :  { %v1170_v6 = vpop.xlane.xlu1 %1169 }
 0x3a1   :  { %v1172_v16 = vmul.f32 0.00390625, %v1170_v6 }
 0x3a3   :  { %v1394_v18 = vpack.c.bf16 %v1172_v16, %v1171_v7 }
 0x3a5   :  { %1395 = vmatprep.subr.bf16.mxu1 %v1394_v18 }
 0x3a6   :  { %1397 = vmatpush3.bf16.msra.mxu1 %v1394_v18 }
 0x3a9   :  { %1324 = vmatmul.mubr.msk.f32.vlgmr.msra.gmra.mrb[6].mxu1 %vm1079_vm9, %v1068_v63 }
 0x3b3   :  { %v1073_v19 = vpop.xlane.xlu0 %1072 }
 0x3b4   :  { %v1077_v56 = vmul.f32 0.00390625, %v1073_v19 }
 0x3b7   :  { %v1076_v55 = vpop.xlane.xlu0 %1075 }
 0x3b8   :  { %v1078_v10 = vmul.f32 0.00390625, %v1076_v55 }
 0x3ba   :  { %v1390_v22 = vpack.c.bf16 %v1078_v10, %v1077_v56 }
 0x3bc   :  { %1391 = vmatprep.subr.bf16.mxu0 %v1390_v22 }
 0x3bd   :  { %1393 = vmatpush3.bf16.msra.mxu0 %v1390_v22 }
 0x3c0   :  { %1317 = vmatmul.mubr.msk.f32.vlgmr.msra.gmra.mrb[6].mxu0 %vm1079_vm9, %v1068_v63 }
 0x47c   :  { %v1325_v58 = vpop.f32.mrb[6].mxu1 }
 0x47d   :  { %v1245_v32 = vadd.f32 %v1325_v58, %v1070_v30  ;;  %v1239_v33 = vpop.f32.mrb[7].mxu1 }
 0x47e   :  { %v1240_v17 = vadd.f32 %v1239_v33, %v1069_v31 }
 0x47f   :  { %1252 = vrot.lane.b32.xlu0 %v1245_v32, %s1413_s0 }
 0x480   :  { %1250 = vrot.lane.b32.xlu1 %v1240_v17, %s1413_s0 }
 0x493   :  { %v1318_v15 = vpop.f32.mrb[6].mxu0 }
 0x494   :  { %v1158_v25 = vadd.f32 %v1318_v15, %v1070_v30  ;;  %v1152_v12 = vpop.f32.mrb[7].mxu0 }
 0x495   :  { %v1153_v38 = vadd.f32 %v1152_v12, %v1069_v31 }
 0x496   :  { %1164 = vst.msk [vmem:[%s2143_s10 + $0x8] sm:$0x3] %vm1163_vm10, %v1158_v25 }
 0x497   :  { %1162 = vst.msk [vmem:[%s2143_s10] sm:$0xff] %vm1161_vm11, %v1153_v38 }
 0x4f1   :  { %v1253_v36 = vpop.permute.xlu0 %1252 }
 0x4f2   :  { %v1251_v57 = vpop.permute.xlu1 %1250  ;;  %1259 = vst.msk [vmem:[%s2143_s10 + $0x8] sm:$0x3] %vm1258_vm12, %v1253_v36 }
 0x4f3   :  { %1257 = vst.msk [vmem:[%s2143_s10] sm:$0xff] %vm1256_vm13, %v1251_v57 }

</bundles_post_ra>
